<compile_context>
chip_gen: v5e
topology: v5e:2x2
jax: 0.10.0
libtpu: 0.0.40
codegen_flags: <defaults>
</compile_context>

<pallas_src>
import functools

import jax
import jax.numpy as jnp
from jax.experimental import pallas as pl
from jax.experimental.pallas import tpu as pltpu


# ---------------------------------------------------------------------------
# Kernel A: channel mean / max reduction (lane-dense, C-tiled, pipelined).
# ---------------------------------------------------------------------------
def _pool_kernel(x_ref, pooled_ref, *, inv_c):
    # x_ref      : (1, Ct, HW) VMEM block (lane-dense channel slab)
    # pooled_ref : (1, 2, HW)  VMEM output block, resident across the C axis
    #              row 0 = running channel sum (-> mean), row 1 = running max
    c = pl.program_id(1)
    x = x_ref[0]                                     # (Ct, HW)
    bsum = jnp.sum(x, axis=0, keepdims=True)         # (1, HW)
    bmax = jnp.max(x, axis=0, keepdims=True)         # (1, HW)

    @pl.when(c == 0)
    def _():
        # Fully overwrite the resident accumulator (no stale values leak).
        pooled_ref[0, 0:1, :] = bsum
        pooled_ref[0, 1:2, :] = bmax

    @pl.when(c > 0)
    def _():
        pooled_ref[0, 0:1, :] = pooled_ref[0, 0:1, :] + bsum
        pooled_ref[0, 1:2, :] = jnp.maximum(pooled_ref[0, 1:2, :], bmax)

    @pl.when(c == pl.num_programs(1) - 1)
    def _():
        pooled_ref[0, 0:1, :] = pooled_ref[0, 0:1, :] * inv_c


# ---------------------------------------------------------------------------
# Kernel B: zero-pad pooled maps in VMEM, KxK conv (2->1, no bias), sigmoid.
# ---------------------------------------------------------------------------
def _conv_kernel(pooled_ref, w_ref, o_ref, pad_ref, *, H, W, K, pad):
    # pooled_ref : (1, 2, H, W)  VMEM block  (row 0 = avg, row 1 = max)
    # w_ref      : (2*K*K,)      SMEM, flattened conv weight [1, 2, K, K]
    # o_ref      : (1, 1, H, W)  VMEM output block
    # pad_ref    : (2, Hp, Wp)   VMEM scratch for the zero-padded pooled maps
    pad_ref[...] = jnp.zeros_like(pad_ref)           # re-zero (scratch persists)
    pad_ref[:, pad:pad + H, pad:pad + W] = pooled_ref[0]
    p = pad_ref[...]                                 # (2, Hp, Wp)

    acc = jnp.zeros((H, W), jnp.float32)
    # Fully unrolled static taps; one shared shifted slice per tap feeds both
    # channel weights (halves the slice work vs. two separate pooled buffers).
    for dy in range(K):
        for dx in range(K):
            sl = p[:, dy:dy + H, dx:dx + W]          # (2, H, W)
            acc = acc + w_ref[dy * K + dx] * sl[0] \
                      + w_ref[K * K + dy * K + dx] * sl[1]
    # TODO(synk): for very large H*W, tile the output spatially to keep `acc`
    # within the 64-vreg file instead of holding the full (H, W) accumulator.
    o_ref[0, 0, :, :] = jax.nn.sigmoid(acc)


# ---------------------------------------------------------------------------
# Wrapper / tiling heuristics.
# ---------------------------------------------------------------------------
def _choose_channel_tile(C, HW, budget_bytes=8 * 1024 * 1024):
    """Largest channel tile whose double-buffered input block fits the budget.

    Keeps the block's second-minor dim a multiple of 8 (or the full C dim) so
    the (8, 128) BlockSpec constraint is satisfied, and leaves ample headroom
    inside v7x's 64 MiB / default 32 MiB scoped VMEM.
    """
    max_ct = max(1, budget_bytes // (2 * HW * 4))
    if C <= max_ct:
        return C
    best = 0
    d = 8
    while d <= max_ct:
        if C % d == 0:
            best = d
        d += 8
    return best if best > 0 else C


def spatial_attention(x, weight, kernel_size=7, channel_tile=None):
    """x: (B, C, H, W) float32 NCHW; weight: (1, 2, K, K) float32."""
    assert kernel_size in (3, 7), "kernel size must be 3 or 7"
    pad = 3 if kernel_size == 7 else 1
    B, C, H, W = x.shape
    K = kernel_size
    HW = H * W
    Hp, Wp = H + 2 * pad, W + 2 * pad

    x_flat = x.astype(jnp.float32).reshape(B, C, HW)       # free, lane-dense
    w_flat = weight.astype(jnp.float32).reshape(2 * K * K)

    ct = channel_tile if channel_tile is not None else _choose_channel_tile(C, HW)
    assert C % ct == 0, "channel tile must divide C"
    num_c = C // ct

    # --- Kernel A: pipelined channel reduce -> (B, 2, H*W) pooled maps ------
    pooled = pl.pallas_call(
        functools.partial(_pool_kernel, inv_c=1.0 / float(C)),
        out_shape=jax.ShapeDtypeStruct((B, 2, HW), jnp.float32),
        grid_spec=pltpu.PrefetchScalarGridSpec(
            num_scalar_prefetch=0,
            grid=(B, num_c),                                 # reduction axis last
            in_specs=[pl.BlockSpec((1, ct, HW), lambda b, c: (b, c, 0))],
            out_specs=pl.BlockSpec((1, 2, HW), lambda b, c: (b, 0, 0)),
        ),
        compiler_params=pltpu.CompilerParams(
            dimension_semantics=("parallel", "arbitrary"),
            vmem_limit_bytes=32 * 1024 * 1024),
    )(x_flat)

    pooled_4d = pooled.reshape(B, 2, H, W)                   # free view

    # --- Kernel B: pad pooled maps in VMEM, KxK conv + sigmoid --------------
    out = pl.pallas_call(
        functools.partial(_conv_kernel, H=H, W=W, K=K, pad=pad),
        out_shape=jax.ShapeDtypeStruct((B, 1, H, W), jnp.float32),
        grid_spec=pltpu.PrefetchScalarGridSpec(
            num_scalar_prefetch=0,
            grid=(B,),
            in_specs=[
                pl.BlockSpec((1, 2, H, W), lambda b: (b, 0, 0, 0)),
                pl.BlockSpec(memory_space=pltpu.MemorySpace.SMEM),
            ],
            out_specs=pl.BlockSpec((1, 1, H, W), lambda b: (b, 0, 0, 0)),
            scratch_shapes=[pltpu.VMEM((2, Hp, Wp), jnp.float32)],
        ),
        compiler_params=pltpu.CompilerParams(
            dimension_semantics=("parallel",)),
    )(pooled_4d, w_flat)

    return out


# ---------------------------------------------------------------------------
# Pure-JAX reference.
# ---------------------------------------------------------------------------
def _reference(x, weight, kernel_size=7):
    pad = 3 if kernel_size == 7 else 1
    avg = jnp.mean(x, axis=1, keepdims=True)
    mx = jnp.max(x, axis=1, keepdims=True)
    cat = jnp.concatenate([avg, mx], axis=1)                 # (B, 2, H, W)
    out = jax.lax.conv_general_dilated(
        cat, weight, window_strides=(1, 1),
        padding=((pad, pad), (pad, pad)),
        dimension_numbers=("NCHW", "OIHW", "NCHW"))
    return jax.nn.sigmoid(out)


if __name__ == "__main__":
    key = jax.random.PRNGKey(0)
    kx, kw, kx2 = jax.random.split(key, 3)

    B, C, H, W = 2, 4, 16, 16
    K = 7
    x = jax.random.normal(kx, (B, C, H, W), dtype=jnp.float32)
    # nn.Conv2d(2, 1, 7, bias=False) weight
    weight = jax.random.normal(kw, (1, 2, K, K), dtype=jnp.float32) * 0.1

    out = jax.block_until_ready(spatial_attention(x, weight, kernel_size=K))
    ref = _reference(x, weight, kernel_size=K)
    assert out.shape == (B, 1, H, W)
    assert jnp.allclose(out, ref, atol=1e-5, rtol=1e-5), "mismatch vs reference"

    # Exercise the multi-step (pipelined) channel-reduction path explicitly.
    C2 = 16
    x2 = jax.random.normal(kx2, (B, C2, H, W), dtype=jnp.float32)
    out2 = jax.block_until_ready(
        spatial_attention(x2, weight, kernel_size=K, channel_tile=8))
    ref2 = _reference(x2, weight, kernel_size=K)
    assert jnp.allclose(out2, ref2, atol=1e-5, rtol=1e-5), "mismatch (tiled C)"

    print("KERNEL_OK")
</pallas_src>

<mosaic_0001>
module attributes {stable_mosaic.version = 11 : i64} {
  func.func @_pool_kernel(%arg0: i32, %arg1: i32, %arg2: memref<1x4x256xf32, #tpu.memory_space<vmem>>, %arg3: memref<1x2x256xf32, #tpu.memory_space<vmem>>) attributes {dimension_semantics = [#tpu.dimension_semantics<parallel>, #tpu.dimension_semantics<arbitrary>], iteration_bounds = array<i64: 2, 1>, scalar_prefetch = 0 : i64, scratch_operands = 0 : i64, tpu.core_type = #tpu.core_type<tc>, window_params = [{transform_indices = @transform_0, window_bounds = array<i64: 1, 4, 256>}, {transform_indices = @transform_1, window_bounds = array<i64: 1, 2, 256>}]} {
    %c0 = arith.constant 0 : index
    %c0_0 = arith.constant 0 : index
    %c0_1 = arith.constant 0 : index
    %0 = vector.load %arg2[%c0, %c0_0, %c0_1] : memref<1x4x256xf32, #tpu.memory_space<vmem>>, vector<1x4x256xf32>
    %1 = vector.shape_cast %0 : vector<1x4x256xf32> to vector<4x256xf32>
    %cst = arith.constant dense<0.000000e+00> : vector<256xf32>
    %2 = vector.multi_reduction <add>, %1, %cst [0] : vector<4x256xf32> to vector<256xf32>
    %3 = vector.shape_cast %2 : vector<256xf32> to vector<1x256xf32>
    %cst_2 = arith.constant dense<0xFF800000> : vector<256xf32>
    %4 = vector.multi_reduction <maximumf>, %1, %cst_2 [0] : vector<4x256xf32> to vector<256xf32>
    %5 = vector.shape_cast %4 : vector<256xf32> to vector<1x256xf32>
    %c0_i32 = arith.constant 0 : i32
    %6 = arith.cmpi eq, %arg1, %c0_i32 : i32
    %7 = arith.extui %6 : i1 to i32
    %c0_i32_3 = arith.constant 0 : i32
    %8 = arith.cmpi ne, %7, %c0_i32_3 : i32
    scf.if %8 {
      %c0_8 = arith.constant 0 : index
      %c0_9 = arith.constant 0 : index
      %c0_10 = arith.constant 0 : index
      %15 = vector.load %arg3[%c0_8, %c0_9, %c0_10] : memref<1x2x256xf32, #tpu.memory_space<vmem>>, vector<1x1x256xf32>
      %16 = vector.shape_cast %15 : vector<1x1x256xf32> to vector<1x256xf32>
      %17 = vector.shape_cast %3 : vector<1x256xf32> to vector<1x1x256xf32>
      tpu.vector_store %arg3[%c0_8, %c0_9, %c0_10], %17 {strides = array<i32>} : memref<1x2x256xf32, #tpu.memory_space<vmem>>, vector<1x1x256xf32>,
      %c0_11 = arith.constant 0 : index
      %c1 = arith.constant 1 : index
      %c0_12 = arith.constant 0 : index
      %18 = vector.load %arg3[%c0_11, %c1, %c0_12] : memref<1x2x256xf32, #tpu.memory_space<vmem>>, vector<1x1x256xf32>
      %19 = vector.shape_cast %18 : vector<1x1x256xf32> to vector<1x256xf32>
      %20 = vector.shape_cast %5 : vector<1x256xf32> to vector<1x1x256xf32>
      tpu.vector_store %arg3[%c0_11, %c1, %c0_12], %20 {strides = array<i32>} : memref<1x2x256xf32, #tpu.memory_space<vmem>>, vector<1x1x256xf32>,
    } else {
    }
    %c0_i32_4 = arith.constant 0 : i32
    %9 = arith.cmpi sgt, %arg1, %c0_i32_4 : i32
    %10 = arith.extui %9 : i1 to i32
    %c0_i32_5 = arith.constant 0 : i32
    %11 = arith.cmpi ne, %10, %c0_i32_5 : i32
    scf.if %11 {
      %c0_8 = arith.constant 0 : index
      %c0_9 = arith.constant 0 : index
      %c0_10 = arith.constant 0 : index
      %15 = vector.load %arg3[%c0_8, %c0_9, %c0_10] : memref<1x2x256xf32, #tpu.memory_space<vmem>>, vector<1x1x256xf32>
      %16 = vector.shape_cast %15 : vector<1x1x256xf32> to vector<1x256xf32>
      %17 = arith.addf %16, %3 : vector<1x256xf32>
      %c0_11 = arith.constant 0 : index
      %c0_12 = arith.constant 0 : index
      %c0_13 = arith.constant 0 : index
      %18 = vector.load %arg3[%c0_11, %c0_12, %c0_13] : memref<1x2x256xf32, #tpu.memory_space<vmem>>, vector<1x1x256xf32>
      %19 = vector.shape_cast %18 : vector<1x1x256xf32> to vector<1x256xf32>
      %20 = vector.shape_cast %17 : vector<1x256xf32> to vector<1x1x256xf32>
      tpu.vector_store %arg3[%c0_11, %c0_12, %c0_13], %20 {strides = array<i32>} : memref<1x2x256xf32, #tpu.memory_space<vmem>>, vector<1x1x256xf32>,
      %c0_14 = arith.constant 0 : index
      %c1 = arith.constant 1 : index
      %c0_15 = arith.constant 0 : index
      %21 = vector.load %arg3[%c0_14, %c1, %c0_15] : memref<1x2x256xf32, #tpu.memory_space<vmem>>, vector<1x1x256xf32>
      %22 = vector.shape_cast %21 : vector<1x1x256xf32> to vector<1x256xf32>
      %23 = arith.maximumf %22, %5 : vector<1x256xf32>
      %c0_16 = arith.constant 0 : index
      %c1_17 = arith.constant 1 : index
      %c0_18 = arith.constant 0 : index
      %24 = vector.load %arg3[%c0_16, %c1_17, %c0_18] : memref<1x2x256xf32, #tpu.memory_space<vmem>>, vector<1x1x256xf32>
      %25 = vector.shape_cast %24 : vector<1x1x256xf32> to vector<1x256xf32>
      %26 = vector.shape_cast %23 : vector<1x256xf32> to vector<1x1x256xf32>
      tpu.vector_store %arg3[%c0_16, %c1_17, %c0_18], %26 {strides = array<i32>} : memref<1x2x256xf32, #tpu.memory_space<vmem>>, vector<1x1x256xf32>,
    } else {
    }
    %c0_i32_6 = arith.constant 0 : i32
    %12 = arith.cmpi eq, %arg1, %c0_i32_6 : i32
    %13 = arith.extui %12 : i1 to i32
    %c0_i32_7 = arith.constant 0 : i32
    %14 = arith.cmpi ne, %13, %c0_i32_7 : i32
    scf.if %14 {
      %c0_8 = arith.constant 0 : index
      %c0_9 = arith.constant 0 : index
      %c0_10 = arith.constant 0 : index
      %15 = vector.load %arg3[%c0_8, %c0_9, %c0_10] : memref<1x2x256xf32, #tpu.memory_space<vmem>>, vector<1x1x256xf32>
      %16 = vector.shape_cast %15 : vector<1x1x256xf32> to vector<1x256xf32>
      %cst_11 = arith.constant 2.500000e-01 : f32
      %17 = vector.broadcast %cst_11 : f32 to vector<1x256xf32>
      %18 = arith.mulf %16, %17 : vector<1x256xf32>
      %c0_12 = arith.constant 0 : index
      %c0_13 = arith.constant 0 : index
      %c0_14 = arith.constant 0 : index
      %19 = vector.load %arg3[%c0_12, %c0_13, %c0_14] : memref<1x2x256xf32, #tpu.memory_space<vmem>>, vector<1x1x256xf32>
      %20 = vector.shape_cast %19 : vector<1x1x256xf32> to vector<1x256xf32>
      %21 = vector.shape_cast %18 : vector<1x256xf32> to vector<1x1x256xf32>
      tpu.vector_store %arg3[%c0_12, %c0_13, %c0_14], %21 {strides = array<i32>} : memref<1x2x256xf32, #tpu.memory_space<vmem>>, vector<1x1x256xf32>,
    } else {
    }
    return
  }
  func.func @transform_0(%arg0: i32, %arg1: i32) -> (i32, i32, i32) {
    %c0_i32 = arith.constant 0 : i32
    %c0_i32_0 = arith.constant 0 : i32
    return %arg0, %arg1, %c0_i32 : i32, i32, i32
  }
  func.func @transform_1(%arg0: i32, %arg1: i32) -> (i32, i32, i32) {
    %c0_i32 = arith.constant 0 : i32
    %c0_i32_0 = arith.constant 0 : i32
    %c0_i32_1 = arith.constant 0 : i32
    return %arg0, %c0_i32, %c0_i32_0 : i32, i32, i32
  }
}

</mosaic_0001>

<bundles_post_ra>
// kernel: tpu_custom_call.1
= control target key start
LH: loop header
LB: loop body
LE: loop exit
PB: predicated region body
PF: predicated region fallthrough
CT: control target
= control target key end

     0   :  { %6 = vsyncpa [#allocation3], 0  ;;  %s691_s0 = inlined_call_operand.hbm [shape: f32[2,4,256], index: 0, kind: input, shape index: {}]   ;;  %s692_s1 = inlined_call_operand.hbm [shape: f32[2,2,256], index: 1, kind: output, shape index: {}]  }
   0x1   :  { %8 = vsyncpa [#allocation3 + $0x1], 0 }
   0x2   :  { %9 = vsyncpa [#allocation4], 0 }
   0x3   :  { %11 = vsyncpa [#allocation4 + $0x1], 0  ;;  %s554_s6 = smov 0   ;;  %s556_s7 = smov 0  }
   0x4   :  { %s558_s8 = smov 0   ;;  %s560_s9 = smov 0  }
   0x5   :  { %s562_s10 = smov 0   ;;  %s564_s11 = smov 0  }
   0x6 LB: > { %s348_s12 = sadd.s32 4294967295, %s542_s11   ;;  %s349_s13 = sadd.s32 4294967294, %s542_s11   ;;  %s542_s11 = sphi %s564_s11, %s17_s11   ;;  %s538_s10 = sphi %s562_s10, %s703_s10   ;;  %s534_s9 = sphi %s560_s9, %s702_s9   ;;  %s530_s8 = sphi %s558_s8, %s701_s8   ;;  %s526_s7 = sphi %s556_s7, %s700_s7   ;;  %s522_s6 = sphi %s554_s6, %s699_s6  }
   0x7   : > { %s29_s14 = sadd.s32 1, %s538_s10  ;;  %s38_s15 = sadd.s32 1, %s530_s8 }
   0x8   : > { %p31_p0 = scmp.ge.s32.totalorder %s29_s14, 2  ;;  %p45_p1 = scmp.ne.s32.totalorder %s530_s8, %s526_s7 }
   0x9   : > { %p46_p2 = scmp.eq.s32.totalorder %s542_s11, 0  ;;  %p51_p3 = scmp.ne.s32.totalorder %s526_s7, %s522_s6 }
   0xa   : > { %s705_s14 = smov (%p31_p0, %s29_s14), 0  ;;  %p52_p5 = scmp.eq.s32.totalorder %s348_s12, 0 }
   0xb   : > { %p595_p4 = por %p46_p2, %p45_p1  ;;  %s33_s17 = ssub.s32 %s538_s10, %s705_s14 }
   0xc   : > { %p75_p6 = scmp.eq.s32.totalorder %s348_s12, 1  ;;  %p36_p7 = scmp.eq.s32.totalorder %s33_s17, 0 }
   0xd   : > { %p601_p8 = por %p52_p5, %p51_p3  ;;  %p81_p10 = scmp.eq.s32.totalorder %s349_s13, 1 }
   0xe   : > { %p605_p9 = por %p75_p6, %p45_p1  ;;  %p351_p12 = scmp.ge.s32.totalorder %s542_s11, 2 }
   0xf   : > { %s610_s20 = scalar_select %p36_p7, %s530_s8, %s38_s15  }
  0x10   : > { %p612_p11 = por %p81_p10, %p51_p3  ;;  %p380_p13 = scmp.lt.s32.totalorder %s542_s11, 2 }
  0x11   : > { %s101_s22 = sand.u32 1, %s530_s8   ;;  %s366_s24 = sshll.u32 %s538_s10, 3 }
  0x12   : > { %s352_s23 = sshll.u32 %s101_s22, 3  ;;  %s112_s27 = scalar_lea.hbm %s691_s0, %s366_s24 }
  0x13   : > { %s105_s28 = scalar_lea.vmem [#allocation2], %s352_s23  ;;  %s114_s30 = sshll.u32 %s112_s27, 4  ;;  %s115_s30 = int_to_ptr.hbm [resolvable:$true] %s114_s30 }
  0x14   : > { %s116_s29 = sshll.u32 %s105_s28, 4  ;;  %p373_p0 = pnand %p380_p13, %p595_p4  ;;  %s117_s29 = int_to_ptr.vmem [resolvable:$true] %s116_s29 }
  0x15   : > { %p355_p1 = scmp.ge.s32.totalorder %s542_s11, 1  ;;  %p121_p2 = scmp.lt.s32.totalorder %s542_s11, 3 }
  0x16   : > { %s102_s2 = scalar_lea.sflag [#allocation3], %s101_s22 }
  0x17   : > { %375 = dma.hbm_to_vmem [thread:$0]  (!%p373_p0), %s115_s30, 128, %s117_s29, %s102_s2  }
  0x18   : > { %p122_p3 = pnand %p355_p1, %p121_p2 }
  0x19   : > { %s628_s3 = sand.u32 (!%p122_p3), 1, %s526_s7  }
  0x1a   : > { %125 = sbr.rel (%p122_p3) target bundleno = 70 (0x46), region = 24  ;;  %s356_s4 = sshll.u32 (!%p122_p3), %s628_s3, 3 }
  0x1b   : > { %s128_s5 = scalar_lea.sflag (!%p122_p3), [#allocation3], %s628_s3  ;;  %s131_s12 = scalar_lea.vmem (!%p122_p3), [#allocation2], %s356_s4 }
  0x1f   : > { %513 = dma.done.wait (%p601_p8), %s128_s5, 128  }
  0x20   : > { %515 = vsyncadd (%p601_p8), %s128_s5, 4294967168  ;;  %v151_v0 = vld [vmem:[%s131_s12] sm:$0xff]  ;;  %vm158_vm0 = vcmask 1043456   ;;  %v202_v15 = vlaneseq  ;;  %s357_s13 = sshll.u32 %s628_s3, 2  ;;  %vm199_vm1 = vcmask 1040384   ;;  %s367_s15 = sshll.u32 %s534_s9, 2 }
  0x21   : > { %153 = vst [vmem:[#allocation1] ss:$2 sm:$0xff] %v151_v0  ;;  %s150_s16 = scalar_lea.vmem [#allocation5], %s357_s13  ;;  %s262_s22 = scalar_lea.hbm %s692_s1, %s367_s15 }
  0x22   : > { %vm641_vm2 = vcmp.lt.s32.totalorder %v202_v15, 256  ;;  %s264_s23 = sshll.u32 %s150_s16, 4  ;;  %s266_s24 = sshll.u32 %s262_s22, 4  ;;  %s265_s23 = int_to_ptr.vmem [resolvable:$true] %s264_s23  ;;  %s267_s24 = int_to_ptr.hbm [resolvable:$true] %s266_s24 }
  0x23   : > { %s251_s9 = scalar_lea.sflag [#allocation4], %s628_s3  ;;  %s474_s25 = sshra.s32 %s267_s24, 4  ;;  %s475_s25 = int_to_ptr.hbm [resolvable:$true] %s474_s25 }
  0x24   : > { %s476_s26 = scalar_lea.hbm %s475_s25, 4  ;;  %s480_s29 = scalar_lea.hbm %s692_s1, 8 }
  0x25   : > { %p477_p4 = scmp.ne.s32.totalorder %s475_s25, %s476_s26  ;;  %p481_p7 = scmp.lt.s32.totalorder %s475_s25, %s692_s1 }
  0x26   : > { %p482_p8 = scmp.lt.s32.totalorder %s480_s29, %s476_s26 }
  0x27   : > { %p478_p5 = pnand %p477_p4, %p605_p9 }
  0x28   : > { %v154_v1 = vld.sshfl [vmem:[#allocation1] sm:$0xff pattern:$0x75316420]  ;;  %v155_v2 = vld.sshfl [vmem:[#allocation1 + $0x8] sm:$0xff pattern:$0x75316420]  ;;  %p483_p10 = por %p482_p8, %p481_p7 }
  0x29   : > { %v159_v3 = vsel %vm158_vm0, %v154_v1, 0.0  ;;  %v166_v4 = vsel %vm158_vm0, %v155_v2, 0.0  ;;  %173 = vst [vmem:[#allocation1] ss:$2 sm:$0xff] %v151_v0  ;;  %p479_p6 = pneg %p478_p5 }
  0x2a   : > { %v160_v5 = vrot.slane %v159_v3, 4  ;;  %v167_v6 = vrot.slane %v166_v4, 4 }
  0x2b   : > { %p484_p13 = pnand %p483_p10, %p479_p6 }
  0x2c   : > { %v161_v7 = vadd.f32 %v160_v5, %v159_v3  ;;  %v168_v8 = vadd.f32 %v167_v6, %v166_v4 }
  0x2e   : > { %v162_v9 = vrot.slane %v161_v7, 2  ;;  %v169_v10 = vrot.slane %v168_v8, 2 }
  0x30   : > { %v163_v11 = vadd.f32 %v162_v9, %v161_v7  ;;  %v170_v12 = vadd.f32 %v169_v10, %v168_v8  ;;  %v174_v13 = vld.sshfl [vmem:[#allocation1] sm:$0xff pattern:$0x75316420]  ;;  %v175_v14 = vld.sshfl [vmem:[#allocation1 + $0x8] sm:$0xff pattern:$0x75316420] }
  0x31   : > { %v178_v16 = vsel %vm158_vm0, %v174_v13, -inf  ;;  %v185_v17 = vsel %vm158_vm0, %v175_v14, -inf }
  0x32   : > { %v164_v18 = vrot.slane %v163_v11, 1  ;;  %v171_v19 = vrot.slane %v170_v12, 1  ;;  %v179_v20 = vrot.slane %v178_v16, 4  ;;  %v186_v21 = vrot.slane %v185_v17, 4 }
  0x34   : > { %v172_v22 = vadd.f32 %v171_v19, %v170_v12  ;;  %v180_v23 = vmax.f32 %v178_v16, %v179_v20  ;;  %v187_v24 = vmax.f32 %v185_v17, %v186_v21  ;;  %v165_v26 = vadd.f32 %v164_v18, %v163_v11 }
  0x36   : > { %v198_v27 = vrot.slane %v172_v22, 7  ;;  %v181_v28 = vrot.slane %v180_v23, 2  ;;  %v188_v29 = vrot.slane %v187_v24, 2 }
  0x38   : > { %v200_v30 = vsel %vm199_vm1, %v165_v26, %v198_v27  ;;  %v182_v31 = vmax.f32 %v180_v23, %v181_v28  ;;  %v189_v32 = vmax.f32 %v187_v24, %v188_v29 }
  0x39   : > { %206 = vst.msk [vmem:[%s150_s16] ss:$2 sm:$0x3] %vm641_vm2, %v200_v30 }
  0x3a   : > { %v183_v33 = vrot.slane %v182_v31, 1  ;;  %v190_v34 = vrot.slane %v189_v32, 1 }
  0x3c   : > { %v191_v35 = vmax.f32 %v189_v32, %v190_v34  ;;  %v184_v36 = vmax.f32 %v182_v31, %v183_v33 }
  0x3e   : > { %v209_v37 = vrot.slane %v191_v35, 7 }
  0x40   : > { %v210_v38 = vsel %vm199_vm1, %v184_v36, %v209_v37  ;;  %v243_v39 = vld [vmem:[%s150_s16] ss:$2 sm:$0x3] }
  0x41   : > { %358 = vst.msk [vmem:[%s150_s16 + $0x1] ss:$2 sm:$0x3] %vm641_vm2, %v210_v38  ;;  %v244_v40 = vmul.f32 0.25, %v243_v39 }
  0x43   : > { %249 = vst.msk [vmem:[%s150_s16] ss:$2 sm:$0x3] %vm641_vm2, %v244_v40 }
  0x44   : > { %487 = shalt.err (!%p484_p13)
}
  0x45   : > { %370 = dma.vmem_to_hbm [thread:$0]  (%p605_p9), %s265_s23, 64, %s267_s24, %s251_s9  }
  0x46 PF: > { %s278_s3 = sand.u32 1, %s522_s6   ;;  %p377_p0 = pnand %p351_p12, %p612_p11 }
  0x47   : > { %s279_s4 = scalar_lea.sflag [#allocation4], %s278_s3 }
  0x48   : > { %p378_p1 = pneg %p377_p0 }
  0x4a   : > { %517 = dma.done.wait (%p378_p1), %s279_s4, 64  }
  0x4b   : > { %519 = vsyncadd (%p378_p1), %s279_s4, 4294967232  ;;  %s17_s11 = sadd.s32 1, %s542_s11   ;;  %s699_s6 = smov %s526_s7 }
  0x4c   : > { %p14_p2 = scmp.ge.s32.totalorder %s17_s11, 4   ;;  %s700_s7 = smov %s530_s8 }
  0x4d   : > { %s701_s8 = smov %s610_s20  ;;  %s702_s9 = smov %s538_s10 }
  0x4e   : > { %s703_s10 = smov %s705_s14  ;;  %16 = sbr.rel (!%p14_p2) target bundleno = 6 (0x6), region = 83 }
  0x53   :  { %285 = vsyncpa [#allocation3], 1 }
  0x54   :  { %287 = vsyncpa [#allocation3 + $0x1], 1 }
  0x55   :  { %288 = vsyncpa [#allocation4], 1 }
  0x56   :  { %290 = vsyncpa [#allocation4 + $0x1], 1 }

</bundles_post_ra>
